<compile_context>
chip_gen: v7x
topology: tpu7x:2x2x1
jax: 0.10.0
libtpu: 0.0.40
codegen_flags: <defaults>
</compile_context>

<pallas_src>
import functools

import jax
import jax.numpy as jnp
from jax.experimental import pallas as pl
from jax.experimental.pallas import tpu as pltpu

_LANE = 128
_SUBLANE = 8

# Tri-state: None = not yet probed, True/False = Buffered(1) supported or not.
_BUFFERED_OK = None


def _round_up(x, m):
    return (x + m - 1) // m * m


def _cdiv(a, b):
    return -(-a // b)


def _resident_spec(shape, use_buffered):
    """BlockSpec for an array that stays resident in VMEM across the grid."""
    if use_buffered:
        # Constant index_map -> single buffer is enough (halves VMEM on v7x).
        return pl.BlockSpec(shape, lambda i: (0, 0), pipeline_mode=pl.Buffered(1))
    return pl.BlockSpec(shape, lambda i: (0, 0))


def _fused_mlp_kernel(x_ref, *refs, n_layers, negative_slope, compute_dtype):
    """Entire MLP for one batch tile: chained MXU matmuls + VPU LeakyReLU."""
    o_ref = refs[-1]
    wb_refs = refs[:-1]

    h = x_ref[...]  # (tm, d_in_pad), already in compute_dtype
    for i in range(n_layers):
        w = wb_refs[2 * i][...]       # (d_prev_pad, d_next_pad) compute_dtype
        b = wb_refs[2 * i + 1][...]   # (1, d_next_pad) f32
        y = jnp.dot(
            h.astype(compute_dtype), w, preferred_element_type=jnp.float32
        ) + b
        if i != n_layers - 1:
            y = jnp.where(y >= 0.0, y, negative_slope * y)  # LeakyReLU
        # Dropout(p=0) is the identity; BatchNorm disabled (use_batchnorm=False).
        h = y
    o_ref[...] = h.astype(o_ref.dtype)  # lane-dense store


@functools.partial(
    jax.jit,
    static_argnames=("dim_out", "negative_slope", "block_batch", "use_buffered"),
)
def _mlp_forward_impl(x, flat_wb, *, dim_out, negative_slope, block_batch,
                      use_buffered):
    batch, dim_in = x.shape
    n_layers = len(flat_wb) // 2
    compute_dtype = flat_wb[0].dtype
    d_in_pad = flat_wb[0].shape[0]
    d_out_pad = flat_wb[-2].shape[1]
    max_width = max([d_in_pad] + [flat_wb[2 * i].shape[1] for i in range(n_layers)])

    # ---- batch tile: minimise padding waste, keep >=2 tiles for v7x's 2 TCs --
    n_tiles = max(1, _cdiv(batch, block_batch))
    if batch >= 2 * _SUBLANE:
        n_tiles = max(n_tiles, 2)
    tm = _round_up(_cdiv(batch, n_tiles), _SUBLANE)

    # ---- explicit VMEM budget and per-generation cap -------------------------
    cdt_bytes = jnp.dtype(compute_dtype).itemsize
    wb_bytes = sum(int(a.size) * a.dtype.itemsize for a in flat_wb)
    wb_mult = 1 if use_buffered else 2

    try:
        info = pltpu.get_tpu_info()
        phys_vmem = int(getattr(info, "vmem_capacity_bytes", 64 * 1024 * 1024))
    except Exception:  # pragma: no cover - conservative fallback
        phys_vmem = 64 * 1024 * 1024
    # ~48 MiB on v7x (64 MiB/TC), ~96 MiB on v5e/v6e (128 MiB), never > 100 MiB.
    vmem_cap = min(phys_vmem * 3 // 4, 100 * 1024 * 1024)

    def budget(tm_):
        act = 2 * tm_ * d_in_pad * cdt_bytes   # double-buffered input tile
        act += 2 * tm_ * d_out_pad * 4         # double-buffered f32 output tile
        act += 2 * tm_ * max_width * 4         # live f32 intermediates
        return wb_mult * wb_bytes + act

    while budget(tm) > vmem_cap and tm > _SUBLANE:
        tm = max(_SUBLANE, _round_up(tm // 2, _SUBLANE))

    batch_pad = _round_up(batch, tm)
    vmem_limit = int(min(vmem_cap, max(16 * 1024 * 1024, 2 * budget(tm))))

    # ---- pad/cast the input outside the kernel (half-width DMA in bf16) ------
    x_pad = jnp.zeros((batch_pad, d_in_pad), compute_dtype)
    x_pad = x_pad.at[:batch, :dim_in].set(x.astype(compute_dtype))

    # ---- block specs ----------------------------------------------------------
    in_specs = [pl.BlockSpec((tm, d_in_pad), lambda i: (i, 0))]
    for a in flat_wb:
        in_specs.append(_resident_spec(a.shape, use_buffered))
    out_spec = pl.BlockSpec((tm, d_out_pad), lambda i: (i, 0))

    kernel = functools.partial(
        _fused_mlp_kernel,
        n_layers=n_layers,
        negative_slope=negative_slope,
        compute_dtype=compute_dtype,
    )

    out_pad = pl.pallas_call(
        kernel,
        out_shape=jax.ShapeDtypeStruct((batch_pad, d_out_pad), jnp.float32),
        grid=(batch_pad // tm,),
        in_specs=in_specs,
        out_specs=out_spec,
        compiler_params=pltpu.CompilerParams(
            dimension_semantics=("parallel",),
            vmem_limit_bytes=vmem_limit,
        ),
    )(x_pad, *flat_wb)

    return out_pad[:batch, :dim_out]


def prepare_params(params, *, compute_dtype=jnp.bfloat16):
    """Pad + cast weights ONCE (hoisted out of the per-call hot path).

    Returns (flat_wb, dim_out): flat_wb = (w0, b0, w1, b1, ...) with weights in
    `compute_dtype`, rows/cols zero-padded to lane multiples; biases in f32.
    """
    dim_in = params[0][0].shape[0]
    prev_pad = _round_up(dim_in, _LANE)
    flat = []
    for w, b in params:
        fi, fo = w.shape
        fo_pad = _round_up(fo, _LANE)
        w_p = (
            jnp.zeros((prev_pad, fo_pad), compute_dtype)
            .at[:fi, :fo]
            .set(w.astype(compute_dtype))
        )
        b_p = (
            jnp.zeros((1, fo_pad), jnp.float32)
            .at[:, :fo]
            .set(b.reshape(1, fo).astype(jnp.float32))
        )
        flat.extend([w_p, b_p])
        prev_pad = fo_pad
    dim_out = params[-1][0].shape[1]
    return tuple(flat), dim_out


def mlp_forward(x, prepared, *, negative_slope=0.01, block_batch=1024):
    """Forward pass of DeterministicFeedForwardNeuralNetwork (fused kernel)."""
    global _BUFFERED_OK
    flat_wb, dim_out = prepared
    kwargs = dict(
        dim_out=int(dim_out),
        negative_slope=float(negative_slope),
        block_batch=int(block_batch),
    )
    if _BUFFERED_OK is None:
        # First call probes Buffered(1) support (single-buffered resident
        # weights); fall back to default double-buffering if unavailable.
        try:
            out = jax.block_until_ready(
                _mlp_forward_impl(x, flat_wb, use_buffered=True, **kwargs)
            )
            _BUFFERED_OK = True
            return out
        except Exception:
            _BUFFERED_OK = False
    return _mlp_forward_impl(x, flat_wb, use_buffered=_BUFFERED_OK, **kwargs)


def init_params(key, dim_in, dim_out, hid_layers):
    """PyTorch-style nn.Linear init: uniform(+-1/sqrt(fan_in))."""
    dims = [dim_in] + list(hid_layers) + [dim_out]
    params = []
    for idx in range(len(dims) - 1):
        key, kw, kb = jax.random.split(key, 3)
        fan_in, fan_out = dims[idx], dims[idx + 1]
        bound = 1.0 / jnp.sqrt(jnp.float32(fan_in))
        w = jax.random.uniform(
            kw, (fan_in, fan_out), jnp.float32, minval=-bound, maxval=bound
        )
        b = jax.random.uniform(
            kb, (1, fan_out), jnp.float32, minval=-bound, maxval=bound
        )
        params.append((w, b))
    return params


def mlp_reference(x, params, *, negative_slope=0.01, compute_dtype=jnp.float32):
    """Pure-JAX reference (weights stored (in, out): y = x @ W + b)."""
    h = x.astype(jnp.float32)
    n_layers = len(params)
    for i, (w, b) in enumerate(params):
        y = jnp.dot(
            h.astype(compute_dtype),
            w.astype(compute_dtype),
            preferred_element_type=jnp.float32,
            precision=jax.lax.Precision.HIGHEST,
        ) + b.reshape(1, -1)
        if i != n_layers - 1:
            y = jnp.where(y >= 0.0, y, negative_slope * y)
        h = y
    return h


if __name__ == "__main__":
    key = jax.random.PRNGKey(0)
    k_x, k_x2, k_p = jax.random.split(key, 3)

    dim_in, hid_layers, dim_out = 32, [64, 32], 16
    negative_slope = 0.01
    params = init_params(k_p, dim_in, dim_out, hid_layers)

    # --- f32 compute path, small batch ---------------------------------------
    # (Tolerance allows for MXU multi-pass f32 vs XLA-default matmul precision.)
    prepared_f32 = prepare_params(params, compute_dtype=jnp.float32)
    batch = 8
    x = jax.random.normal(k_x, (batch, dim_in), jnp.float32)
    out = jax.block_until_ready(
        mlp_forward(x, prepared_f32, negative_slope=negative_slope)
    )
    ref = mlp_reference(x, params, negative_slope=negative_slope)
    assert out.shape == (batch, dim_out)
    assert jnp.allclose(out, ref, atol=1e-2, rtol=1e-2), float(
        jnp.max(jnp.abs(out - ref))
    )

    # --- larger non-tile-multiple batch: multi-tile grid, tm=152 -> pad 304 ---
    batch2 = 300
    x2 = jax.random.normal(k_x2, (batch2, dim_in), jnp.float32)
    out2 = jax.block_until_ready(
        mlp_forward(x2, prepared_f32, negative_slope=negative_slope)
    )
    ref2 = mlp_reference(x2, params, negative_slope=negative_slope)
    assert out2.shape == (batch2, dim_out)
    assert jnp.allclose(out2, ref2, atol=1e-2, rtol=1e-2), float(
        jnp.max(jnp.abs(out2 - ref2))
    )

    # --- default bf16 MXU path (v6e/v7x native), f32 accumulation -------------
    prepared_bf16 = prepare_params(params)  # compute_dtype defaults to bf16
    out3 = jax.block_until_ready(
        mlp_forward(x2, prepared_bf16, negative_slope=negative_slope)
    )
    ref3 = mlp_reference(
        x2, params, negative_slope=negative_slope, compute_dtype=jnp.bfloat16
    )
    assert out3.shape == (batch2, dim_out)
    assert jnp.allclose(out3, ref3, atol=5e-2, rtol=5e-2), float(
        jnp.max(jnp.abs(out3 - ref3))
    )

    print("KERNEL_OK")
</pallas_src>

<mosaic_0001>
module attributes {stable_mosaic.version = 11 : i64} {
  func.func @_fused_mlp_kernel(%arg0: i32, %arg1: memref<8x128xf32, #tpu.memory_space<vmem>>, %arg2: memref<128x128xf32, #tpu.memory_space<vmem>>, %arg3: memref<1x128xf32, #tpu.memory_space<vmem>>, %arg4: memref<128x128xf32, #tpu.memory_space<vmem>>, %arg5: memref<1x128xf32, #tpu.memory_space<vmem>>, %arg6: memref<128x128xf32, #tpu.memory_space<vmem>>, %arg7: memref<1x128xf32, #tpu.memory_space<vmem>>, %arg8: memref<8x128xf32, #tpu.memory_space<vmem>>) attributes {dimension_semantics = [#tpu.dimension_semantics<parallel>], iteration_bounds = array<i64: 1>, scalar_prefetch = 0 : i64, scratch_operands = 0 : i64, tpu.core_type = #tpu.core_type<tc>, window_params = [{transform_indices = @transform_0, window_bounds = array<i64: 8, 128>}, {pipeline_mode = #tpu.pipeline_mode<synchronous>, transform_indices = @transform_1, window_bounds = array<i64: 128, 128>}, {pipeline_mode = #tpu.pipeline_mode<synchronous>, transform_indices = @transform_2, window_bounds = array<i64: 1, 128>}, {pipeline_mode = #tpu.pipeline_mode<synchronous>, transform_indices = @transform_3, window_bounds = array<i64: 128, 128>}, {pipeline_mode = #tpu.pipeline_mode<synchronous>, transform_indices = @transform_4, window_bounds = array<i64: 1, 128>}, {pipeline_mode = #tpu.pipeline_mode<synchronous>, transform_indices = @transform_5, window_bounds = array<i64: 128, 128>}, {pipeline_mode = #tpu.pipeline_mode<synchronous>, transform_indices = @transform_6, window_bounds = array<i64: 1, 128>}, {transform_indices = @transform_7, window_bounds = array<i64: 8, 128>}]} {
    %c0 = arith.constant 0 : index
    %c0_0 = arith.constant 0 : index
    %0 = vector.load %arg1[%c0, %c0_0] : memref<8x128xf32, #tpu.memory_space<vmem>>, vector<8x128xf32>
    %c0_1 = arith.constant 0 : index
    %c0_2 = arith.constant 0 : index
    %1 = vector.load %arg2[%c0_1, %c0_2] : memref<128x128xf32, #tpu.memory_space<vmem>>, vector<128x128xf32>
    %c0_3 = arith.constant 0 : index
    %c0_4 = arith.constant 0 : index
    %2 = vector.load %arg3[%c0_3, %c0_4] : memref<1x128xf32, #tpu.memory_space<vmem>>, vector<1x128xf32>
    %cst = arith.constant dense<0.000000e+00> : vector<8x128xf32>
    %3 = tpu.matmul %0, %1, %cst {dimension_numbers = #tpu.dot_dimension_numbers<[1], [0], [0], [1], [0, 0, 1, 1], [], []>} : vector<8x128xf32>, vector<128x128xf32>, vector<8x128xf32> -> vector<8x128xf32>
    %4 = vector.broadcast %2 : vector<1x128xf32> to vector<8x128xf32>
    %5 = arith.addf %3, %4 : vector<8x128xf32>
    %cst_5 = arith.constant 0.000000e+00 : f32
    %6 = vector.broadcast %cst_5 : f32 to vector<8x128xf32>
    %7 = arith.cmpf oge, %5, %6 : vector<8x128xf32>
    %cst_6 = arith.constant 0.00999999977 : f32
    %8 = vector.broadcast %cst_6 : f32 to vector<8x128xf32>
    %9 = arith.mulf %8, %5 : vector<8x128xf32>
    %10 = arith.select %7, %5, %9 : vector<8x128xi1>, vector<8x128xf32>
    %c0_7 = arith.constant 0 : index
    %c0_8 = arith.constant 0 : index
    %11 = vector.load %arg4[%c0_7, %c0_8] : memref<128x128xf32, #tpu.memory_space<vmem>>, vector<128x128xf32>
    %c0_9 = arith.constant 0 : index
    %c0_10 = arith.constant 0 : index
    %12 = vector.load %arg5[%c0_9, %c0_10] : memref<1x128xf32, #tpu.memory_space<vmem>>, vector<1x128xf32>
    %cst_11 = arith.constant dense<0.000000e+00> : vector<8x128xf32>
    %13 = tpu.matmul %10, %11, %cst_11 {dimension_numbers = #tpu.dot_dimension_numbers<[1], [0], [0], [1], [0, 0, 1, 1], [], []>} : vector<8x128xf32>, vector<128x128xf32>, vector<8x128xf32> -> vector<8x128xf32>
    %14 = vector.broadcast %12 : vector<1x128xf32> to vector<8x128xf32>
    %15 = arith.addf %13, %14 : vector<8x128xf32>
    %cst_12 = arith.constant 0.000000e+00 : f32
    %16 = vector.broadcast %cst_12 : f32 to vector<8x128xf32>
    %17 = arith.cmpf oge, %15, %16 : vector<8x128xf32>
    %cst_13 = arith.constant 0.00999999977 : f32
    %18 = vector.broadcast %cst_13 : f32 to vector<8x128xf32>
    %19 = arith.mulf %18, %15 : vector<8x128xf32>
    %20 = arith.select %17, %15, %19 : vector<8x128xi1>, vector<8x128xf32>
    %c0_14 = arith.constant 0 : index
    %c0_15 = arith.constant 0 : index
    %21 = vector.load %arg6[%c0_14, %c0_15] : memref<128x128xf32, #tpu.memory_space<vmem>>, vector<128x128xf32>
    %c0_16 = arith.constant 0 : index
    %c0_17 = arith.constant 0 : index
    %22 = vector.load %arg7[%c0_16, %c0_17] : memref<1x128xf32, #tpu.memory_space<vmem>>, vector<1x128xf32>
    %cst_18 = arith.constant dense<0.000000e+00> : vector<8x128xf32>
    %23 = tpu.matmul %20, %21, %cst_18 {dimension_numbers = #tpu.dot_dimension_numbers<[1], [0], [0], [1], [0, 0, 1, 1], [], []>} : vector<8x128xf32>, vector<128x128xf32>, vector<8x128xf32> -> vector<8x128xf32>
    %24 = vector.broadcast %22 : vector<1x128xf32> to vector<8x128xf32>
    %25 = arith.addf %23, %24 : vector<8x128xf32>
    %c0_19 = arith.constant 0 : index
    %c0_20 = arith.constant 0 : index
    %26 = vector.load %arg8[%c0_19, %c0_20] : memref<8x128xf32, #tpu.memory_space<vmem>>, vector<8x128xf32>
    tpu.vector_store %arg8[%c0_19, %c0_20], %25 {strides = array<i32>} : memref<8x128xf32, #tpu.memory_space<vmem>>, vector<8x128xf32>,
    return
  }
  func.func @transform_0(%arg0: i32) -> (i32, i32) {
    %c0_i32 = arith.constant 0 : i32
    %c0_i32_0 = arith.constant 0 : i32
    return %arg0, %c0_i32 : i32, i32
  }
  func.func @transform_1(%arg0: i32) -> (i32, i32) {
    %c0_i32 = arith.constant 0 : i32
    %c0_i32_0 = arith.constant 0 : i32
    %c0_i32_1 = arith.constant 0 : i32
    return %c0_i32, %c0_i32_0 : i32, i32
  }
  func.func @transform_2(%arg0: i32) -> (i32, i32) {
    %c0_i32 = arith.constant 0 : i32
    %c0_i32_0 = arith.constant 0 : i32
    %c0_i32_1 = arith.constant 0 : i32
    return %c0_i32, %c0_i32_0 : i32, i32
  }
  func.func @transform_3(%arg0: i32) -> (i32, i32) {
    %c0_i32 = arith.constant 0 : i32
    %c0_i32_0 = arith.constant 0 : i32
    %c0_i32_1 = arith.constant 0 : i32
    return %c0_i32, %c0_i32_0 : i32, i32
  }
  func.func @transform_4(%arg0: i32) -> (i32, i32) {
    %c0_i32 = arith.constant 0 : i32
    %c0_i32_0 = arith.constant 0 : i32
    %c0_i32_1 = arith.constant 0 : i32
    return %c0_i32, %c0_i32_0 : i32, i32
  }
  func.func @transform_5(%arg0: i32) -> (i32, i32) {
    %c0_i32 = arith.constant 0 : i32
    %c0_i32_0 = arith.constant 0 : i32
    %c0_i32_1 = arith.constant 0 : i32
    return %c0_i32, %c0_i32_0 : i32, i32
  }
  func.func @transform_6(%arg0: i32) -> (i32, i32) {
    %c0_i32 = arith.constant 0 : i32
    %c0_i32_0 = arith.constant 0 : i32
    %c0_i32_1 = arith.constant 0 : i32
    return %c0_i32, %c0_i32_0 : i32, i32
  }
  func.func @transform_7(%arg0: i32) -> (i32, i32) {
    %c0_i32 = arith.constant 0 : i32
    %c0_i32_0 = arith.constant 0 : i32
    return %arg0, %c0_i32 : i32, i32
  }
}

module attributes {stable_mosaic.version = 11 : i64} {
  func.func @_fused_mlp_kernel(%arg0: i32, %arg1: memref<8x128xf32, #tpu.memory_space<vmem>>, %arg2: memref<128x128xf32, #tpu.memory_space<vmem>>, %arg3: memref<1x128xf32, #tpu.memory_space<vmem>>, %arg4: memref<128x128xf32, #tpu.memory_space<vmem>>, %arg5: memref<1x128xf32, #tpu.memory_space<vmem>>, %arg6: memref<128x128xf32, #tpu.memory_space<vmem>>, %arg7: memref<1x128xf32, #tpu.memory_space<vmem>>, %arg8: memref<8x128xf32, #tpu.memory_space<vmem>>) attributes {dimension_semantics = [#tpu.dimension_semantics<parallel>], iteration_bounds = array<i64: 1>, scalar_prefetch = 0 : i64, scratch_operands = 0 : i64, tpu.core_type = #tpu.core_type<tc>, window_params = [{transform_indices = @transform_0, window_bounds = array<i64: 8, 128>}, {pipeline_mode = #tpu.pipeline_mode<synchronous>, transform_indices = @transform_1, window_bounds = array<i64: 128, 128>}, {pipeline_mode = #tpu.pipeline_mode<synchronous>, transform_indices = @transform_2, window_bounds = array<i64: 1, 128>}, {pipeline_mode = #tpu.pipeline_mode<synchronous>, transform_indices = @transform_3, window_bounds = array<i64: 128, 128>}, {pipeline_mode = #tpu.pipeline_mode<synchronous>, transform_indices = @transform_4, window_bounds = array<i64: 1, 128>}, {pipeline_mode = #tpu.pipeline_mode<synchronous>, transform_indices = @transform_5, window_bounds = array<i64: 128, 128>}, {pipeline_mode = #tpu.pipeline_mode<synchronous>, transform_indices = @transform_6, window_bounds = array<i64: 1, 128>}, {transform_indices = @transform_7, window_bounds = array<i64: 8, 128>}]} {
    %c0 = arith.constant 0 : index
    %c0_0 = arith.constant 0 : index
    %0 = vector.load %arg1[%c0, %c0_0] : memref<8x128xf32, #tpu.memory_space<vmem>>, vector<8x128xf32>
    %c0_1 = arith.constant 0 : index
    %c0_2 = arith.constant 0 : index
    %1 = vector.load %arg2[%c0_1, %c0_2] : memref<128x128xf32, #tpu.memory_space<vmem>>, vector<128x128xf32>
    %c0_3 = arith.constant 0 : index
    %c0_4 = arith.constant 0 : index
    %2 = vector.load %arg3[%c0_3, %c0_4] : memref<1x128xf32, #tpu.memory_space<vmem>>, vector<1x128xf32>
    %cst = arith.constant dense<0.000000e+00> : vector<8x128xf32>
    %3 = tpu.matmul %0, %1, %cst {dimension_numbers = #tpu.dot_dimension_numbers<[1], [0], [0], [1], [0, 0, 1, 1], [], []>} : vector<8x128xf32>, vector<128x128xf32>, vector<8x128xf32> -> vector<8x128xf32>
    %4 = vector.broadcast %2 : vector<1x128xf32> to vector<8x128xf32>
    %5 = arith.addf %3, %4 : vector<8x128xf32>
    %cst_5 = arith.constant 0.000000e+00 : f32
    %6 = vector.broadcast %cst_5 : f32 to vector<8x128xf32>
    %7 = arith.cmpf oge, %5, %6 : vector<8x128xf32>
    %cst_6 = arith.constant 0.00999999977 : f32
    %8 = vector.broadcast %cst_6 : f32 to vector<8x128xf32>
    %9 = arith.mulf %8, %5 : vector<8x128xf32>
    %10 = arith.select %7, %5, %9 : vector<8x128xi1>, vector<8x128xf32>
    %c0_7 = arith.constant 0 : index
    %c0_8 = arith.constant 0 : index
    %11 = vector.load %arg4[%c0_7, %c0_8] : memref<128x128xf32, #tpu.memory_space<vmem>>, vector<128x128xf32>
    %c0_9 = arith.constant 0 : index
    %c0_10 = arith.constant 0 : index
    %12 = vector.load %arg5[%c0_9, %c0_10] : memref<1x128xf32, #tpu.memory_space<vmem>>, vector<1x128xf32>
    %cst_11 = arith.constant dense<0.000000e+00> : vector<8x128xf32>
    %13 = tpu.matmul %10, %11, %cst_11 {dimension_numbers = #tpu.dot_dimension_numbers<[1], [0], [0], [1], [0, 0, 1, 1], [], []>} : vector<8x128xf32>, vector<128x128xf32>, vector<8x128xf32> -> vector<8x128xf32>
    %14 = vector.broadcast %12 : vector<1x128xf32> to vector<8x128xf32>
    %15 = arith.addf %13, %14 : vector<8x128xf32>
    %cst_12 = arith.constant 0.000000e+00 : f32
    %16 = vector.broadcast %cst_12 : f32 to vector<8x128xf32>
    %17 = arith.cmpf oge, %15, %16 : vector<8x128xf32>
    %cst_13 = arith.constant 0.00999999977 : f32
    %18 = vector.broadcast %cst_13 : f32 to vector<8x128xf32>
    %19 = arith.mulf %18, %15 : vector<8x128xf32>
    %20 = arith.select %17, %15, %19 : vector<8x128xi1>, vector<8x128xf32>
    %c0_14 = arith.constant 0 : index
    %c0_15 = arith.constant 0 : index
    %21 = vector.load %arg6[%c0_14, %c0_15] : memref<128x128xf32, #tpu.memory_space<vmem>>, vector<128x128xf32>
    %c0_16 = arith.constant 0 : index
    %c0_17 = arith.constant 0 : index
    %22 = vector.load %arg7[%c0_16, %c0_17] : memref<1x128xf32, #tpu.memory_space<vmem>>, vector<1x128xf32>
    %cst_18 = arith.constant dense<0.000000e+00> : vector<8x128xf32>
    %23 = tpu.matmul %20, %21, %cst_18 {dimension_numbers = #tpu.dot_dimension_numbers<[1], [0], [0], [1], [0, 0, 1, 1], [], []>} : vector<8x128xf32>, vector<128x128xf32>, vector<8x128xf32> -> vector<8x128xf32>
    %24 = vector.broadcast %22 : vector<1x128xf32> to vector<8x128xf32>
    %25 = arith.addf %23, %24 : vector<8x128xf32>
    %c0_19 = arith.constant 0 : index
    %c0_20 = arith.constant 0 : index
    %26 = vector.load %arg8[%c0_19, %c0_20] : memref<8x128xf32, #tpu.memory_space<vmem>>, vector<8x128xf32>
    tpu.vector_store %arg8[%c0_19, %c0_20], %25 {strides = array<i32>} : memref<8x128xf32, #tpu.memory_space<vmem>>, vector<8x128xf32>,
    return
  }
  func.func @transform_0(%arg0: i32) -> (i32, i32) {
    %c0_i32 = arith.constant 0 : i32
    %c0_i32_0 = arith.constant 0 : i32
    return %arg0, %c0_i32 : i32, i32
  }
  func.func @transform_1(%arg0: i32) -> (i32, i32) {
    %c0_i32 = arith.constant 0 : i32
    %c0_i32_0 = arith.constant 0 : i32
    %c0_i32_1 = arith.constant 0 : i32
    return %c0_i32, %c0_i32_0 : i32, i32
  }
  func.func @transform_2(%arg0: i32) -> (i32, i32) {
    %c0_i32 = arith.constant 0 : i32
    %c0_i32_0 = arith.constant 0 : i32
    %c0_i32_1 = arith.constant 0 : i32
    return %c0_i32, %c0_i32_0 : i32, i32
  }
  func.func @transform_3(%arg0: i32) -> (i32, i32) {
    %c0_i32 = arith.constant 0 : i32
    %c0_i32_0 = arith.constant 0 : i32
    %c0_i32_1 = arith.constant 0 : i32
    return %c0_i32, %c0_i32_0 : i32, i32
  }
  func.func @transform_4(%arg0: i32) -> (i32, i32) {
    %c0_i32 = arith.constant 0 : i32
    %c0_i32_0 = arith.constant 0 : i32
    %c0_i32_1 = arith.constant 0 : i32
    return %c0_i32, %c0_i32_0 : i32, i32
  }
  func.func @transform_5(%arg0: i32) -> (i32, i32) {
    %c0_i32 = arith.constant 0 : i32
    %c0_i32_0 = arith.constant 0 : i32
    %c0_i32_1 = arith.constant 0 : i32
    return %c0_i32, %c0_i32_0 : i32, i32
  }
  func.func @transform_6(%arg0: i32) -> (i32, i32) {
    %c0_i32 = arith.constant 0 : i32
    %c0_i32_0 = arith.constant 0 : i32
    %c0_i32_1 = arith.constant 0 : i32
    return %c0_i32, %c0_i32_0 : i32, i32
  }
  func.func @transform_7(%arg0: i32) -> (i32, i32) {
    %c0_i32 = arith.constant 0 : i32
    %c0_i32_0 = arith.constant 0 : i32
    return %arg0, %c0_i32 : i32, i32
  }
}

</mosaic_0001>

<bundles_post_ra>
// kernel: _mlp_forward_impl.1
= control target key start
LH: loop header
LB: loop body
LE: loop exit
PB: predicated region body
PF: predicated region fallthrough
CT: control target
= control target key end

     0   :  { %12 = vsyncpa [#allocation3], 0  ;;  %s860_s0 = inlined_call_operand.vmem [shape: f32[8,128], index: 0, kind: input, shape index: {}]   ;;  %s861_s1 = inlined_call_operand.hbm [shape: f32[128,128], index: 1, kind: input, shape index: {}]   ;;  %s862_s2 = inlined_call_operand.vmem [shape: f32[1,128], index: 2, kind: input, shape index: {}]   ;;  %s863_s3 = inlined_call_operand.hbm [shape: f32[128,128], index: 3, kind: input, shape index: {}]   ;;  %s864_s4 = inlined_call_operand.vmem [shape: f32[1,128], index: 4, kind: input, shape index: {}]   ;;  %s865_s5 = inlined_call_operand.hbm [shape: f32[128,128], index: 5, kind: input, shape index: {}]   ;;  %s866_s6 = inlined_call_operand.vmem [shape: f32[1,128], index: 6, kind: input, shape index: {}]   ;;  %s867_s7 = inlined_call_operand.hbm [shape: f32[8,128], index: 7, kind: output, shape index: {}]  }
   0x1   :  { %13 = vsyncpa [#allocation6], 0 }
   0x2   :  { %14 = vsyncpa [#allocation4], 0  ;;  %s705_s24 = smov [#allocation5]   ;;  %s706_s26 = smov [#allocation2]  }
   0x3   :  { %s36_s25 = sshll.u32 %s705_s24, 4  ;;  %s22_s27 = sshll.u32 %s706_s26, 4  ;;  %s37_s25 = int_to_ptr.vmem [resolvable:$true] %s36_s25  ;;  %s754_s27 = int_to_ptr.vmem [resolvable:$true] %s22_s27 }
   0x4   :  { %s611_s30 = scalar_lea.hbm %s863_s3, 2048 }
   0x5   :  { %p612_p0 = scmp.ne.s32.totalorder %s863_s3, %s611_s30  ;;  %p615_p1 = scmp.lt.u32.totalorder %s611_s30, %s863_s3 }
   0x7   :  { %p617_p2 = pnand %p615_p1, %p612_p0 }
   0x9   :  { %620 = shalt.err (!%p617_p2)
}
   0xa   :  { %s621_s12 = scalar_lea.vmem %s37_s25, 2048  ;;  %p626_p4 = scmp.lt.s32.totalorder %s37_s25, %s37_s25 }
   0xb   :  { %p622_p3 = scmp.ne.s32.totalorder %s37_s25, %s621_s12  ;;  %p627_p5 = scmp.lt.s32.totalorder %s621_s12, %s621_s12 }
   0xd   :  { %p628_p6 = por %p627_p5, %p626_p4 }
   0xf   :  { %p629_p7 = pnand %p628_p6, %p622_p3 }
  0x11   :  { %632 = shalt.err (!%p629_p7)
}
  0x12   :  { %s707_s13 = smov 128   ;;  %s708_s14 = smov 8  }
  0x13   :  { %42 = dma.hbm_to_vmem [thread:$0]  %s863_s3, 2048, %s37_s25, [#allocation6], %s707_s13, %s707_s13, %s708_s14  }
  0x14   :  { %s633_s19 = scalar_lea.hbm %s861_s1, 2048 }
  0x15   :  { %p634_p8 = scmp.ne.s32.totalorder %s861_s1, %s633_s19  ;;  %p637_p9 = scmp.lt.u32.totalorder %s633_s19, %s861_s1 }
  0x17   :  { %p639_p10 = pnand %p637_p9, %p634_p8 }
  0x19   :  { %642 = shalt.err (!%p639_p10)
}
  0x1a   :  { %s643_s24 = scalar_lea.vmem %s754_s27, 2048  ;;  %p648_p12 = scmp.lt.s32.totalorder %s754_s27, %s754_s27 }
  0x1b   :  { %p644_p11 = scmp.ne.s32.totalorder %s754_s27, %s643_s24  ;;  %p649_p13 = scmp.lt.s32.totalorder %s643_s24, %s643_s24 }
  0x1d   :  { %p650_p0 = por %p649_p13, %p648_p12 }
  0x1f   :  { %p651_p1 = pnand %p650_p0, %p644_p11 }
  0x21   :  { %654 = shalt.err (!%p651_p1)
}
  0x22   :  { %28 = dma.hbm_to_vmem [thread:$0]  %s861_s1, 2048, %s754_s27, [#allocation3], %s707_s13, %s707_s13, %s708_s14  }
  0x23   :  { %s709_s26 = smov [#allocation7]   ;;  %s655_s8 = scalar_lea.hbm %s865_s5, 2048 }
  0x24   :  { %s50_s28 = sshll.u32 %s709_s26, 4  ;;  %p656_p2 = scmp.ne.s32.totalorder %s865_s5, %s655_s8  ;;  %s51_s28 = int_to_ptr.vmem [resolvable:$true] %s50_s28 }
  0x25   :  { %p659_p3 = scmp.lt.u32.totalorder %s655_s8, %s865_s5 }
  0x27   :  { %p661_p4 = pnand %p659_p3, %p656_p2 }
  0x29   :  { %664 = shalt.err (!%p661_p4)
}
  0x2a   :  { %s665_s15 = scalar_lea.vmem %s51_s28, 2048  ;;  %p670_p6 = scmp.lt.s32.totalorder %s51_s28, %s51_s28 }
  0x2b   :  { %p666_p5 = scmp.ne.s32.totalorder %s51_s28, %s665_s15  ;;  %p671_p7 = scmp.lt.s32.totalorder %s665_s15, %s665_s15 }
  0x2d   :  { %p672_p8 = por %p671_p7, %p670_p6 }
  0x2f   :  { %p673_p9 = pnand %p672_p8, %p666_p5 }
  0x31   :  { %676 = shalt.err (!%p673_p9)
}
  0x32   :  { %56 = dma.hbm_to_vmem [thread:$0]  %s865_s5, 2048, %s51_s28, [#allocation6], %s707_s13, %s707_s13, %s708_s14  }
  0x33   :  { %699 = dma.done.wait [#allocation3], 2048  }
  0x34   :  { %700 = vsyncadd [#allocation3], 4294965248 }
  0x35   :  { %701 = dma.done.wait [#allocation6], 4096  }
  0x36   :  { %702 = vsyncadd [#allocation6], 4294963200  ;;  %v710_v0 = vmov 0.0|0.0   ;;  %vm711_vm0 = vmmov 0   ;;  %v712_v1 = vmov 0.0   ;;  %v69_v2 = vld [vmem:[#allocation2] sm:$0xff] }
  0x37   :  { %530 = vmatprep.subr.bf16.mxu0 %v710_v0  ;;  %457 = vmatprep.mubr.msk.f32.mxu0 %vm711_vm0, %v712_v1  ;;  %v70_v3 = vld [vmem:[#allocation2 + $0x8] sm:$0xff]  ;;  %v71_v4 = vld [vmem:[#allocation2 + $0x10] sm:$0xff]  ;;  %v72_v6 = vld [vmem:[#allocation2 + $0x18] sm:$0xff]  ;;  %s713_s19 = smov [#allocation8]  }
  0x38   :  { %554 = vmatprep.subr.bf16.mxu1 %v710_v0  ;;  %492 = vmatprep.mubr.msk.f32.mxu1 %vm711_vm0, %v712_v1  ;;  %v531_v5 = vpack.c.bf16 %v70_v3, %v69_v2  ;;  %v534_v7 = vpack.c.bf16 %v72_v6, %v71_v4  ;;  %v73_v8 = vld [vmem:[#allocation2 + $0x20] sm:$0xff]  ;;  %v74_v9 = vld [vmem:[#allocation2 + $0x28] sm:$0xff]  ;;  %v167_v12 = vld [vmem:[#allocation5 + $0x10] sm:$0xff]  ;;  %s361_s20 = sshll.u32 %s713_s19, 4  ;;  %s362_s20 = int_to_ptr.vmem [resolvable:$true] %s361_s20 }
  0x39   :  { %v165_v10 = vld [vmem:[#allocation5] sm:$0xff]  ;;  %v166_v11 = vld [vmem:[#allocation5 + $0x8] sm:$0xff]  ;;  %v168_v13 = vld [vmem:[#allocation5 + $0x18] sm:$0xff]  ;;  %v537_v14 = vpack.c.bf16 %v74_v9, %v73_v8  ;;  %s677_s21 = scalar_lea.vmem %s362_s20, 128  ;;  %p682_p11 = scmp.lt.s32.totalorder %s362_s20, %s362_s20 }
  0x3a   :  { %532 = vmatpush3.bf16.msra.mxu0 %v531_v5  ;;  %v555_v15 = vpack.c.bf16 %v166_v11, %v165_v10  ;;  %v75_v16 = vld [vmem:[#allocation2 + $0x30] sm:$0xff]  ;;  %v76_v17 = vld [vmem:[#allocation2 + $0x38] sm:$0xff]  ;;  %v558_v18 = vpack.c.bf16 %v168_v13, %v167_v12  ;;  %v169_v19 = vld [vmem:[#allocation5 + $0x20] sm:$0xff]  ;;  %p678_p10 = scmp.ne.s32.totalorder %s362_s20, %s677_s21  ;;  %p683_p12 = scmp.lt.s32.totalorder %s677_s21, %s677_s21 }
  0x3b   :  { %533 = vmatprep.subr.bf16.mxu0 %v710_v0  ;;  %v170_v20 = vld [vmem:[#allocation5 + $0x28] sm:$0xff]  ;;  %v540_v21 = vpack.c.bf16 %v76_v17, %v75_v16  ;;  %v77_v22 = vld [vmem:[#allocation2 + $0x40] sm:$0xff]  ;;  %v171_v25 = vld [vmem:[#allocation5 + $0x30] sm:$0xff] }
  0x3c   :  { %556 = vmatpush3.bf16.msra.mxu1 %v555_v15  ;;  %v78_v23 = vld [vmem:[#allocation2 + $0x48] sm:$0xff]  ;;  %v561_v24 = vpack.c.bf16 %v170_v20, %v169_v19  ;;  %v172_v26 = vld [vmem:[#allocation5 + $0x38] sm:$0xff]  ;;  %v79_v28 = vld [vmem:[#allocation2 + $0x50] sm:$0xff]  ;;  %p684_p13 = por %p683_p12, %p682_p11 }
  0x3d   :  { %557 = vmatprep.subr.bf16.mxu1 %v710_v0  ;;  %v543_v27 = vpack.c.bf16 %v78_v23, %v77_v22  ;;  %v80_v29 = vld [vmem:[#allocation2 + $0x58] sm:$0xff]  ;;  %v564_v30 = vpack.c.bf16 %v172_v26, %v171_v25  ;;  %v173_v31 = vld [vmem:[#allocation5 + $0x40] sm:$0xff]  ;;  %v174_v32 = vld [vmem:[#allocation5 + $0x48] sm:$0xff] }
  0x3e   :  { %535 = vmatpush3.bf16.msra.mxu0 %v534_v7  ;;  %v546_v33 = vpack.c.bf16 %v80_v29, %v79_v28  ;;  %v81_v34 = vld [vmem:[#allocation2 + $0x60] sm:$0xff]  ;;  %v82_v35 = vld [vmem:[#allocation2 + $0x68] sm:$0xff]  ;;  %v567_v36 = vpack.c.bf16 %v174_v32, %v173_v31  ;;  %v175_v37 = vld [vmem:[#allocation5 + $0x50] sm:$0xff]  ;;  %p685_p0 = pnand %p684_p13, %p678_p10 }
  0x3f   :  { %536 = vmatprep.subr.bf16.mxu0 %v710_v0  ;;  %v176_v38 = vld [vmem:[#allocation5 + $0x58] sm:$0xff]  ;;  %v549_v39 = vpack.c.bf16 %v82_v35, %v81_v34  ;;  %v83_v40 = vld [vmem:[#allocation2 + $0x70] sm:$0xff]  ;;  %v177_v43 = vld [vmem:[#allocation5 + $0x60] sm:$0xff] }
  0x40   :  { %559 = vmatpush3.bf16.msra.mxu1 %v558_v18  ;;  %v84_v41 = vld [vmem:[#allocation2 + $0x78] sm:$0xff]  ;;  %v570_v42 = vpack.c.bf16 %v176_v38, %v175_v37  ;;  %v178_v44 = vld [vmem:[#allocation5 + $0x68] sm:$0xff]  ;;  %v68_v47 = vld [vmem:[%s860_s0] sm:$0xff] }
  0x41   :  { %560 = vmatprep.subr.bf16.mxu1 %v710_v0  ;;  %v552_v45 = vpack.c.bf16 %v84_v41, %v83_v40  ;;  %v573_v46 = vpack.c.bf16 %v178_v44, %v177_v43  ;;  %v179_v48 = vld [vmem:[#allocation5 + $0x70] sm:$0xff]  ;;  %v180_v49 = vld [vmem:[#allocation5 + $0x78] sm:$0xff]  ;;  %v261_v51 = vld [vmem:[#allocation7] sm:$0xff] }
  0x42   :  { %538 = vmatpush3.bf16.msra.mxu0 %v537_v14  ;;  %v576_v50 = vpack.c.bf16 %v180_v49, %v179_v48  ;;  %v262_v52 = vld [vmem:[#allocation7 + $0x8] sm:$0xff]  ;;  %v263_v53 = vld [vmem:[#allocation7 + $0x10] sm:$0xff]  ;;  %v264_v55 = vld [vmem:[#allocation7 + $0x18] sm:$0xff] }
  0x43   :  { %539 = vmatprep.subr.bf16.mxu0 %v710_v0  ;;  %v579_v54 = vpack.c.bf16 %v262_v52, %v261_v51  ;;  %v582_v56 = vpack.c.bf16 %v264_v55, %v263_v53  ;;  %v265_v57 = vld [vmem:[#allocation7 + $0x20] sm:$0xff]  ;;  %v266_v58 = vld [vmem:[#allocation7 + $0x28] sm:$0xff]  ;;  %v267_v60 = vld [vmem:[#allocation7 + $0x30] sm:$0xff] }
  0x44   :  { %562 = vmatpush3.bf16.msra.mxu1 %v561_v24  ;;  %v585_v59 = vpack.c.bf16 %v266_v58, %v265_v57  ;;  %v268_v61 = vld [vmem:[#allocation7 + $0x38] sm:$0xff]  ;;  %v269_v63 = vld [vmem:[#allocation7 + $0x40] sm:$0xff]  ;;  %v271_v3 = vld [vmem:[#allocation7 + $0x50] sm:$0xff] }
  0x45   :  { %563 = vmatprep.subr.bf16.mxu1 %v710_v0  ;;  %v588_v62 = vpack.c.bf16 %v268_v61, %v267_v60  ;;  %v272_v4 = vld [vmem:[#allocation7 + $0x58] sm:$0xff]  ;;  %v273_v6 = vld [vmem:[#allocation7 + $0x60] sm:$0xff]  ;;  %v274_v7 = vld [vmem:[#allocation7 + $0x68] sm:$0xff] }
  0x46   :  { %541 = vmatpush3.bf16.msra.mxu0 %v540_v21  ;;  %v594_v5 = vpack.c.bf16 %v272_v4, %v271_v3  ;;  %v597_v8 = vpack.c.bf16 %v274_v7, %v273_v6  ;;  %v371_v9 = vld [vmem:[%s862_s2] ss:$0 sm:$0xff]  ;;  %v275_v15 = vld [vmem:[#allocation7 + $0x70] sm:$0xff]  ;;  %v276_v16 = vld [vmem:[#allocation7 + $0x78] sm:$0xff] }
  0x47   :  { %542 = vmatprep.subr.bf16.mxu0 %v710_v0  ;;  %v600_v17 = vpack.c.bf16 %v276_v16, %v275_v15  ;;  %v372_v18 = vld [vmem:[%s864_s4] ss:$0 sm:$0xff] }
  0x48   :  { %565 = vmatpush3.bf16.msra.mxu1 %v564_v30  ;;  %v373_v23 = vld [vmem:[%s866_s6] ss:$0 sm:$0xff] }
  0x49   :  { %566 = vmatprep.subr.bf16.mxu1 %v710_v0 }
  0x4a   :  { %544 = vmatpush3.bf16.msra.mxu0 %v543_v27 }
  0x4b   :  { %545 = vmatprep.subr.bf16.mxu0 %v710_v0 }
  0x4c   :  { %568 = vmatpush3.bf16.msra.mxu1 %v567_v36 }
  0x4d   :  { %569 = vmatprep.subr.bf16.mxu1 %v710_v0 }
  0x4e   :  { %547 = vmatpush3.bf16.msra.mxu0 %v546_v33 }
  0x4f   :  { %548 = vmatprep.subr.bf16.mxu0 %v710_v0 }
  0x50   :  { %571 = vmatpush3.bf16.msra.mxu1 %v570_v42 }
  0x51   :  { %572 = vmatprep.subr.bf16.mxu1 %v710_v0 }
  0x52   :  { %550 = vmatpush3.bf16.msra.mxu0 %v549_v39 }
  0x53   :  { %551 = vmatprep.subr.bf16.mxu0 %v710_v0 }
  0x54   :  { %574 = vmatpush3.bf16.msra.mxu1 %v573_v46 }
  0x55   :  { %575 = vmatprep.subr.bf16.mxu1 %v710_v0 }
  0x56   :  { %553 = vmatpush3.bf16.msra.mxu0 %v552_v45 }
  0x57   :  { %578 = vmatprep.subr.bf16.mxu0 %v710_v0 }
  0x58   :  { %577 = vmatpush3.bf16.msra.mxu1 %v576_v50 }
  0x59   :  { %458 = vmatmul.mubr.f32.vlgmr.msra.gmra.mrb[0].mxu0 %v68_v47 }
  0x5a   :  { %527 = vmatprep.mubr.msk.f32.mxu0 %vm711_vm0, %v712_v1  ;;  %580 = vmatpush3.bf16.msra.mxu0 %v579_v54  ;;  %v270_v1 = vld [vmem:[#allocation7 + $0x48] sm:$0xff] }
  0x5b   :  { %581 = vmatprep.subr.bf16.mxu0 %v710_v0  ;;  %v591_v2 = vpack.c.bf16 %v270_v1, %v269_v63 }
  0x5e   :  { %583 = vmatpush3.bf16.msra.mxu0 %v582_v56 }
  0x5f   :  { %584 = vmatprep.subr.bf16.mxu0 %v710_v0 }
  0x62   :  { %586 = vmatpush3.bf16.msra.mxu0 %v585_v59 }
  0x63   :  { %587 = vmatprep.subr.bf16.mxu0 %v710_v0 }
  0x66   :  { %589 = vmatpush3.bf16.msra.mxu0 %v588_v62 }
  0x67   :  { %590 = vmatprep.subr.bf16.mxu0 %v710_v0 }
  0x6a   :  { %592 = vmatpush3.bf16.msra.mxu0 %v591_v2 }
  0x6b   :  { %593 = vmatprep.subr.bf16.mxu0 %v710_v0 }
  0x6e   :  { %595 = vmatpush3.bf16.msra.mxu0 %v594_v5 }
  0x6f   :  { %596 = vmatprep.subr.bf16.mxu0 %v710_v0 }
  0x72   :  { %598 = vmatpush3.bf16.msra.mxu0 %v597_v8 }
  0x73   :  { %599 = vmatprep.subr.bf16.mxu0 %v710_v0 }
  0x76   :  { %601 = vmatpush3.bf16.msra.mxu0 %v600_v17 }
 0x12c   :  { %v158_v10 = vpop.f32.mrb[0].mxu0 }
 0x12d   :  { %v159_v11 = vadd.f32 %v371_v9, %v158_v10  ;;  %v459_v12 = vpop.f32.mrb[1].mxu0 }
 0x12f   :  { %v163_v13 = vmul.f32 0.01, %v159_v11  ;;  %vm162_vm1 = vcmp.ge.f32.partialorder %v159_v11, 0.0 }
 0x131   :  { %v164_v14 = vsel %vm162_vm1, %v159_v11, %v163_v13 }
 0x132   :  { %493 = vmatmul.mubr.f32.vlgmr.msra.gmra.mrb[0].mxu1 %v164_v14 }
 0x205   :  { %v254_v0 = vpop.f32.mrb[0].mxu1 }
 0x206   :  { %v255_v19 = vadd.f32 %v372_v18, %v254_v0  ;;  %v494_v20 = vpop.f32.mrb[1].mxu1 }
 0x208   :  { %vm258_vm2 = vcmp.ge.f32.partialorder %v255_v19, 0.0  ;;  %v259_v21 = vmul.f32 0.01, %v255_v19 }
 0x20a   :  { %v260_v22 = vsel %vm258_vm2, %v255_v19, %v259_v21 }
 0x20b   :  { %528 = vmatmul.mubr.f32.vlgmr.msra.gmra.mrb[2].mxu0 %v260_v22 }
 0x2de   :  { %v350_v24 = vpop.f32.mrb[2].mxu0 }
 0x2df   :  { %v351_v25 = vadd.f32 %v373_v23, %v350_v24  ;;  %v529_v26 = vpop.f32.mrb[3].mxu0 }
 0x2e1   :  { %354 = vst [vmem:[#allocation8] sm:$0xff] %v351_v25 }
 0x2e2   :  { %688 = shalt.err (!%p685_p0)
}
 0x2e3   :  { %s689_s23 = scalar_lea.hbm %s867_s7, 128 }
 0x2e4   :  { %p690_p1 = scmp.ne.s32.totalorder %s867_s7, %s689_s23  ;;  %p693_p2 = scmp.lt.u32.totalorder %s689_s23, %s867_s7 }
 0x2e6   :  { %p695_p3 = pnand %p693_p2, %p690_p1 }
 0x2e8   :  { %698 = shalt.err (!%p695_p3)
}
 0x2e9   :  { %364 = dma.vmem_to_hbm [thread:$0]  %s362_s20, 128, %s867_s7, [#allocation4]  }
 0x2ea   :  { %703 = dma.done.wait [#allocation4], 128  }
 0x2eb   :  { %704 = vsyncadd [#allocation4], 4294967168 }
 0x2ec   :  { %368 = vsyncpa [#allocation3], 1 }
 0x2ed   :  { %369 = vsyncpa [#allocation6], 1 }
 0x2ee   :  { %370 = vsyncpa [#allocation4], 1 }

// kernel: _mlp_forward_impl.1
= control target key start
LH: loop header
LB: loop body
LE: loop exit
PB: predicated region body
PF: predicated region fallthrough
CT: control target
= control target key end

     0   :  { %12 = vsyncpa [#allocation3], 0  ;;  %s860_s0 = inlined_call_operand.vmem [shape: f32[8,128], index: 0, kind: input, shape index: {}]   ;;  %s861_s1 = inlined_call_operand.hbm [shape: f32[128,128], index: 1, kind: input, shape index: {}]   ;;  %s862_s2 = inlined_call_operand.vmem [shape: f32[1,128], index: 2, kind: input, shape index: {}]   ;;  %s863_s3 = inlined_call_operand.hbm [shape: f32[128,128], index: 3, kind: input, shape index: {}]   ;;  %s864_s4 = inlined_call_operand.vmem [shape: f32[1,128], index: 4, kind: input, shape index: {}]   ;;  %s865_s5 = inlined_call_operand.hbm [shape: f32[128,128], index: 5, kind: input, shape index: {}]   ;;  %s866_s6 = inlined_call_operand.vmem [shape: f32[1,128], index: 6, kind: input, shape index: {}]   ;;  %s867_s7 = inlined_call_operand.hbm [shape: f32[8,128], index: 7, kind: output, shape index: {}]  }
   0x1   :  { %13 = vsyncpa [#allocation6], 0 }
   0x2   :  { %14 = vsyncpa [#allocation4], 0  ;;  %s705_s24 = smov [#allocation5]   ;;  %s706_s26 = smov [#allocation2]  }
   0x3   :  { %s36_s25 = sshll.u32 %s705_s24, 4  ;;  %s22_s27 = sshll.u32 %s706_s26, 4  ;;  %s37_s25 = int_to_ptr.vmem [resolvable:$true] %s36_s25  ;;  %s754_s27 = int_to_ptr.vmem [resolvable:$true] %s22_s27 }
   0x4   :  { %s611_s30 = scalar_lea.hbm %s863_s3, 2048 }
   0x5   :  { %p612_p0 = scmp.ne.s32.totalorder %s863_s3, %s611_s30  ;;  %p615_p1 = scmp.lt.u32.totalorder %s611_s30, %s863_s3 }
   0x7   :  { %p617_p2 = pnand %p615_p1, %p612_p0 }
   0x9   :  { %620 = shalt.err (!%p617_p2)
}
   0xa   :  { %s621_s12 = scalar_lea.vmem %s37_s25, 2048  ;;  %p626_p4 = scmp.lt.s32.totalorder %s37_s25, %s37_s25 }
   0xb   :  { %p622_p3 = scmp.ne.s32.totalorder %s37_s25, %s621_s12  ;;  %p627_p5 = scmp.lt.s32.totalorder %s621_s12, %s621_s12 }
   0xd   :  { %p628_p6 = por %p627_p5, %p626_p4 }
   0xf   :  { %p629_p7 = pnand %p628_p6, %p622_p3 }
  0x11   :  { %632 = shalt.err (!%p629_p7)
}
  0x12   :  { %s707_s13 = smov 128   ;;  %s708_s14 = smov 8  }
  0x13   :  { %42 = dma.hbm_to_vmem [thread:$0]  %s863_s3, 2048, %s37_s25, [#allocation6], %s707_s13, %s707_s13, %s708_s14  }
  0x14   :  { %s633_s19 = scalar_lea.hbm %s861_s1, 2048 }
  0x15   :  { %p634_p8 = scmp.ne.s32.totalorder %s861_s1, %s633_s19  ;;  %p637_p9 = scmp.lt.u32.totalorder %s633_s19, %s861_s1 }
  0x17   :  { %p639_p10 = pnand %p637_p9, %p634_p8 }
  0x19   :  { %642 = shalt.err (!%p639_p10)
}
  0x1a   :  { %s643_s24 = scalar_lea.vmem %s754_s27, 2048  ;;  %p648_p12 = scmp.lt.s32.totalorder %s754_s27, %s754_s27 }
  0x1b   :  { %p644_p11 = scmp.ne.s32.totalorder %s754_s27, %s643_s24  ;;  %p649_p13 = scmp.lt.s32.totalorder %s643_s24, %s643_s24 }
  0x1d   :  { %p650_p0 = por %p649_p13, %p648_p12 }
  0x1f   :  { %p651_p1 = pnand %p650_p0, %p644_p11 }
  0x21   :  { %654 = shalt.err (!%p651_p1)
}
  0x22   :  { %28 = dma.hbm_to_vmem [thread:$0]  %s861_s1, 2048, %s754_s27, [#allocation3], %s707_s13, %s707_s13, %s708_s14  }
  0x23   :  { %s709_s26 = smov [#allocation7]   ;;  %s655_s8 = scalar_lea.hbm %s865_s5, 2048 }
  0x24   :  { %s50_s28 = sshll.u32 %s709_s26, 4  ;;  %p656_p2 = scmp.ne.s32.totalorder %s865_s5, %s655_s8  ;;  %s51_s28 = int_to_ptr.vmem [resolvable:$true] %s50_s28 }
  0x25   :  { %p659_p3 = scmp.lt.u32.totalorder %s655_s8, %s865_s5 }
  0x27   :  { %p661_p4 = pnand %p659_p3, %p656_p2 }
  0x29   :  { %664 = shalt.err (!%p661_p4)
}
  0x2a   :  { %s665_s15 = scalar_lea.vmem %s51_s28, 2048  ;;  %p670_p6 = scmp.lt.s32.totalorder %s51_s28, %s51_s28 }
  0x2b   :  { %p666_p5 = scmp.ne.s32.totalorder %s51_s28, %s665_s15  ;;  %p671_p7 = scmp.lt.s32.totalorder %s665_s15, %s665_s15 }
  0x2d   :  { %p672_p8 = por %p671_p7, %p670_p6 }
  0x2f   :  { %p673_p9 = pnand %p672_p8, %p666_p5 }
  0x31   :  { %676 = shalt.err (!%p673_p9)
}
  0x32   :  { %56 = dma.hbm_to_vmem [thread:$0]  %s865_s5, 2048, %s51_s28, [#allocation6], %s707_s13, %s707_s13, %s708_s14  }
  0x33   :  { %699 = dma.done.wait [#allocation3], 2048  }
  0x34   :  { %700 = vsyncadd [#allocation3], 4294965248 }
  0x35   :  { %701 = dma.done.wait [#allocation6], 4096  }
  0x36   :  { %702 = vsyncadd [#allocation6], 4294963200  ;;  %v710_v0 = vmov 0.0|0.0   ;;  %vm711_vm0 = vmmov 0   ;;  %v712_v1 = vmov 0.0   ;;  %v69_v2 = vld [vmem:[#allocation2] sm:$0xff] }
  0x37   :  { %530 = vmatprep.subr.bf16.mxu0 %v710_v0  ;;  %457 = vmatprep.mubr.msk.f32.mxu0 %vm711_vm0, %v712_v1  ;;  %v70_v3 = vld [vmem:[#allocation2 + $0x8] sm:$0xff]  ;;  %v71_v4 = vld [vmem:[#allocation2 + $0x10] sm:$0xff]  ;;  %v72_v6 = vld [vmem:[#allocation2 + $0x18] sm:$0xff]  ;;  %s713_s19 = smov [#allocation8]  }
  0x38   :  { %554 = vmatprep.subr.bf16.mxu1 %v710_v0  ;;  %492 = vmatprep.mubr.msk.f32.mxu1 %vm711_vm0, %v712_v1  ;;  %v531_v5 = vpack.c.bf16 %v70_v3, %v69_v2  ;;  %v534_v7 = vpack.c.bf16 %v72_v6, %v71_v4  ;;  %v73_v8 = vld [vmem:[#allocation2 + $0x20] sm:$0xff]  ;;  %v74_v9 = vld [vmem:[#allocation2 + $0x28] sm:$0xff]  ;;  %v167_v12 = vld [vmem:[#allocation5 + $0x10] sm:$0xff]  ;;  %s361_s20 = sshll.u32 %s713_s19, 4  ;;  %s362_s20 = int_to_ptr.vmem [resolvable:$true] %s361_s20 }
  0x39   :  { %v165_v10 = vld [vmem:[#allocation5] sm:$0xff]  ;;  %v166_v11 = vld [vmem:[#allocation5 + $0x8] sm:$0xff]  ;;  %v168_v13 = vld [vmem:[#allocation5 + $0x18] sm:$0xff]  ;;  %v537_v14 = vpack.c.bf16 %v74_v9, %v73_v8  ;;  %s677_s21 = scalar_lea.vmem %s362_s20, 128  ;;  %p682_p11 = scmp.lt.s32.totalorder %s362_s20, %s362_s20 }
  0x3a   :  { %532 = vmatpush3.bf16.msra.mxu0 %v531_v5  ;;  %v555_v15 = vpack.c.bf16 %v166_v11, %v165_v10  ;;  %v75_v16 = vld [vmem:[#allocation2 + $0x30] sm:$0xff]  ;;  %v76_v17 = vld [vmem:[#allocation2 + $0x38] sm:$0xff]  ;;  %v558_v18 = vpack.c.bf16 %v168_v13, %v167_v12  ;;  %v169_v19 = vld [vmem:[#allocation5 + $0x20] sm:$0xff]  ;;  %p678_p10 = scmp.ne.s32.totalorder %s362_s20, %s677_s21  ;;  %p683_p12 = scmp.lt.s32.totalorder %s677_s21, %s677_s21 }
  0x3b   :  { %533 = vmatprep.subr.bf16.mxu0 %v710_v0  ;;  %v170_v20 = vld [vmem:[#allocation5 + $0x28] sm:$0xff]  ;;  %v540_v21 = vpack.c.bf16 %v76_v17, %v75_v16  ;;  %v77_v22 = vld [vmem:[#allocation2 + $0x40] sm:$0xff]  ;;  %v171_v25 = vld [vmem:[#allocation5 + $0x30] sm:$0xff] }
  0x3c   :  { %556 = vmatpush3.bf16.msra.mxu1 %v555_v15  ;;  %v78_v23 = vld [vmem:[#allocation2 + $0x48] sm:$0xff]  ;;  %v561_v24 = vpack.c.bf16 %v170_v20, %v169_v19  ;;  %v172_v26 = vld [vmem:[#allocation5 + $0x38] sm:$0xff]  ;;  %v79_v28 = vld [vmem:[#allocation2 + $0x50] sm:$0xff]  ;;  %p684_p13 = por %p683_p12, %p682_p11 }
  0x3d   :  { %557 = vmatprep.subr.bf16.mxu1 %v710_v0  ;;  %v543_v27 = vpack.c.bf16 %v78_v23, %v77_v22  ;;  %v80_v29 = vld [vmem:[#allocation2 + $0x58] sm:$0xff]  ;;  %v564_v30 = vpack.c.bf16 %v172_v26, %v171_v25  ;;  %v173_v31 = vld [vmem:[#allocation5 + $0x40] sm:$0xff]  ;;  %v174_v32 = vld [vmem:[#allocation5 + $0x48] sm:$0xff] }
  0x3e   :  { %535 = vmatpush3.bf16.msra.mxu0 %v534_v7  ;;  %v546_v33 = vpack.c.bf16 %v80_v29, %v79_v28  ;;  %v81_v34 = vld [vmem:[#allocation2 + $0x60] sm:$0xff]  ;;  %v82_v35 = vld [vmem:[#allocation2 + $0x68] sm:$0xff]  ;;  %v567_v36 = vpack.c.bf16 %v174_v32, %v173_v31  ;;  %v175_v37 = vld [vmem:[#allocation5 + $0x50] sm:$0xff]  ;;  %p685_p0 = pnand %p684_p13, %p678_p10 }
  0x3f   :  { %536 = vmatprep.subr.bf16.mxu0 %v710_v0  ;;  %v176_v38 = vld [vmem:[#allocation5 + $0x58] sm:$0xff]  ;;  %v549_v39 = vpack.c.bf16 %v82_v35, %v81_v34  ;;  %v83_v40 = vld [vmem:[#allocation2 + $0x70] sm:$0xff]  ;;  %v177_v43 = vld [vmem:[#allocation5 + $0x60] sm:$0xff] }
  0x40   :  { %559 = vmatpush3.bf16.msra.mxu1 %v558_v18  ;;  %v84_v41 = vld [vmem:[#allocation2 + $0x78] sm:$0xff]  ;;  %v570_v42 = vpack.c.bf16 %v176_v38, %v175_v37  ;;  %v178_v44 = vld [vmem:[#allocation5 + $0x68] sm:$0xff]  ;;  %v68_v47 = vld [vmem:[%s860_s0] sm:$0xff] }
  0x41   :  { %560 = vmatprep.subr.bf16.mxu1 %v710_v0  ;;  %v552_v45 = vpack.c.bf16 %v84_v41, %v83_v40  ;;  %v573_v46 = vpack.c.bf16 %v178_v44, %v177_v43  ;;  %v179_v48 = vld [vmem:[#allocation5 + $0x70] sm:$0xff]  ;;  %v180_v49 = vld [vmem:[#allocation5 + $0x78] sm:$0xff]  ;;  %v261_v51 = vld [vmem:[#allocation7] sm:$0xff] }
  0x42   :  { %538 = vmatpush3.bf16.msra.mxu0 %v537_v14  ;;  %v576_v50 = vpack.c.bf16 %v180_v49, %v179_v48  ;;  %v262_v52 = vld [vmem:[#allocation7 + $0x8] sm:$0xff]  ;;  %v263_v53 = vld [vmem:[#allocation7 + $0x10] sm:$0xff]  ;;  %v264_v55 = vld [vmem:[#allocation7 + $0x18] sm:$0xff] }
  0x43   :  { %539 = vmatprep.subr.bf16.mxu0 %v710_v0  ;;  %v579_v54 = vpack.c.bf16 %v262_v52, %v261_v51  ;;  %v582_v56 = vpack.c.bf16 %v264_v55, %v263_v53  ;;  %v265_v57 = vld [vmem:[#allocation7 + $0x20] sm:$0xff]  ;;  %v266_v58 = vld [vmem:[#allocation7 + $0x28] sm:$0xff]  ;;  %v267_v60 = vld [vmem:[#allocation7 + $0x30] sm:$0xff] }
  0x44   :  { %562 = vmatpush3.bf16.msra.mxu1 %v561_v24  ;;  %v585_v59 = vpack.c.bf16 %v266_v58, %v265_v57  ;;  %v268_v61 = vld [vmem:[#allocation7 + $0x38] sm:$0xff]  ;;  %v269_v63 = vld [vmem:[#allocation7 + $0x40] sm:$0xff]  ;;  %v271_v3 = vld [vmem:[#allocation7 + $0x50] sm:$0xff] }
  0x45   :  { %563 = vmatprep.subr.bf16.mxu1 %v710_v0  ;;  %v588_v62 = vpack.c.bf16 %v268_v61, %v267_v60  ;;  %v272_v4 = vld [vmem:[#allocation7 + $0x58] sm:$0xff]  ;;  %v273_v6 = vld [vmem:[#allocation7 + $0x60] sm:$0xff]  ;;  %v274_v7 = vld [vmem:[#allocation7 + $0x68] sm:$0xff] }
  0x46   :  { %541 = vmatpush3.bf16.msra.mxu0 %v540_v21  ;;  %v594_v5 = vpack.c.bf16 %v272_v4, %v271_v3  ;;  %v597_v8 = vpack.c.bf16 %v274_v7, %v273_v6  ;;  %v371_v9 = vld [vmem:[%s862_s2] ss:$0 sm:$0xff]  ;;  %v275_v15 = vld [vmem:[#allocation7 + $0x70] sm:$0xff]  ;;  %v276_v16 = vld [vmem:[#allocation7 + $0x78] sm:$0xff] }
  0x47   :  { %542 = vmatprep.subr.bf16.mxu0 %v710_v0  ;;  %v600_v17 = vpack.c.bf16 %v276_v16, %v275_v15  ;;  %v372_v18 = vld [vmem:[%s864_s4] ss:$0 sm:$0xff] }
  0x48   :  { %565 = vmatpush3.bf16.msra.mxu1 %v564_v30  ;;  %v373_v23 = vld [vmem:[%s866_s6] ss:$0 sm:$0xff] }
  0x49   :  { %566 = vmatprep.subr.bf16.mxu1 %v710_v0 }
  0x4a   :  { %544 = vmatpush3.bf16.msra.mxu0 %v543_v27 }
  0x4b   :  { %545 = vmatprep.subr.bf16.mxu0 %v710_v0 }
  0x4c   :  { %568 = vmatpush3.bf16.msra.mxu1 %v567_v36 }
  0x4d   :  { %569 = vmatprep.subr.bf16.mxu1 %v710_v0 }
  0x4e   :  { %547 = vmatpush3.bf16.msra.mxu0 %v546_v33 }
  0x4f   :  { %548 = vmatprep.subr.bf16.mxu0 %v710_v0 }
  0x50   :  { %571 = vmatpush3.bf16.msra.mxu1 %v570_v42 }
  0x51   :  { %572 = vmatprep.subr.bf16.mxu1 %v710_v0 }
  0x52   :  { %550 = vmatpush3.bf16.msra.mxu0 %v549_v39 }
  0x53   :  { %551 = vmatprep.subr.bf16.mxu0 %v710_v0 }
  0x54   :  { %574 = vmatpush3.bf16.msra.mxu1 %v573_v46 }
  0x55   :  { %575 = vmatprep.subr.bf16.mxu1 %v710_v0 }
  0x56   :  { %553 = vmatpush3.bf16.msra.mxu0 %v552_v45 }
  0x57   :  { %578 = vmatprep.subr.bf16.mxu0 %v710_v0 }
  0x58   :  { %577 = vmatpush3.bf16.msra.mxu1 %v576_v50 }
  0x59   :  { %458 = vmatmul.mubr.f32.vlgmr.msra.gmra.mrb[0].mxu0 %v68_v47 }
  0x5a   :  { %527 = vmatprep.mubr.msk.f32.mxu0 %vm711_vm0, %v712_v1  ;;  %580 = vmatpush3.bf16.msra.mxu0 %v579_v54  ;;  %v270_v1 = vld [vmem:[#allocation7 + $0x48] sm:$0xff] }
  0x5b   :  { %581 = vmatprep.subr.bf16.mxu0 %v710_v0  ;;  %v591_v2 = vpack.c.bf16 %v270_v1, %v269_v63 }
  0x5e   :  { %583 = vmatpush3.bf16.msra.mxu0 %v582_v56 }
  0x5f   :  { %584 = vmatprep.subr.bf16.mxu0 %v710_v0 }
  0x62   :  { %586 = vmatpush3.bf16.msra.mxu0 %v585_v59 }
  0x63   :  { %587 = vmatprep.subr.bf16.mxu0 %v710_v0 }
  0x66   :  { %589 = vmatpush3.bf16.msra.mxu0 %v588_v62 }
  0x67   :  { %590 = vmatprep.subr.bf16.mxu0 %v710_v0 }
  0x6a   :  { %592 = vmatpush3.bf16.msra.mxu0 %v591_v2 }
  0x6b   :  { %593 = vmatprep.subr.bf16.mxu0 %v710_v0 }
  0x6e   :  { %595 = vmatpush3.bf16.msra.mxu0 %v594_v5 }
  0x6f   :  { %596 = vmatprep.subr.bf16.mxu0 %v710_v0 }
  0x72   :  { %598 = vmatpush3.bf16.msra.mxu0 %v597_v8 }
  0x73   :  { %599 = vmatprep.subr.bf16.mxu0 %v710_v0 }
  0x76   :  { %601 = vmatpush3.bf16.msra.mxu0 %v600_v17 }
 0x12c   :  { %v158_v10 = vpop.f32.mrb[0].mxu0 }
 0x12d   :  { %v159_v11 = vadd.f32 %v371_v9, %v158_v10  ;;  %v459_v12 = vpop.f32.mrb[1].mxu0 }
 0x12f   :  { %v163_v13 = vmul.f32 0.01, %v159_v11  ;;  %vm162_vm1 = vcmp.ge.f32.partialorder %v159_v11, 0.0 }
 0x131   :  { %v164_v14 = vsel %vm162_vm1, %v159_v11, %v163_v13 }
 0x132   :  { %493 = vmatmul.mubr.f32.vlgmr.msra.gmra.mrb[0].mxu1 %v164_v14 }
 0x205   :  { %v254_v0 = vpop.f32.mrb[0].mxu1 }
 0x206   :  { %v255_v19 = vadd.f32 %v372_v18, %v254_v0  ;;  %v494_v20 = vpop.f32.mrb[1].mxu1 }
 0x208   :  { %vm258_vm2 = vcmp.ge.f32.partialorder %v255_v19, 0.0  ;;  %v259_v21 = vmul.f32 0.01, %v255_v19 }
 0x20a   :  { %v260_v22 = vsel %vm258_vm2, %v255_v19, %v259_v21 }
 0x20b   :  { %528 = vmatmul.mubr.f32.vlgmr.msra.gmra.mrb[2].mxu0 %v260_v22 }
 0x2de   :  { %v350_v24 = vpop.f32.mrb[2].mxu0 }
 0x2df   :  { %v351_v25 = vadd.f32 %v373_v23, %v350_v24  ;;  %v529_v26 = vpop.f32.mrb[3].mxu0 }
 0x2e1   :  { %354 = vst [vmem:[#allocation8] sm:$0xff] %v351_v25 }
 0x2e2   :  { %688 = shalt.err (!%p685_p0)
}
 0x2e3   :  { %s689_s23 = scalar_lea.hbm %s867_s7, 128 }
 0x2e4   :  { %p690_p1 = scmp.ne.s32.totalorder %s867_s7, %s689_s23  ;;  %p693_p2 = scmp.lt.u32.totalorder %s689_s23, %s867_s7 }
 0x2e6   :  { %p695_p3 = pnand %p693_p2, %p690_p1 }
 0x2e8   :  { %698 = shalt.err (!%p695_p3)
}
 0x2e9   :  { %364 = dma.vmem_to_hbm [thread:$0]  %s362_s20, 128, %s867_s7, [#allocation4]  }
 0x2ea   :  { %703 = dma.done.wait [#allocation4], 128  }
 0x2eb   :  { %704 = vsyncadd [#allocation4], 4294967168 }
 0x2ec   :  { %368 = vsyncpa [#allocation3], 1 }
 0x2ed   :  { %369 = vsyncpa [#allocation6], 1 }
 0x2ee   :  { %370 = vsyncpa [#allocation4], 1 }

</bundles_post_ra>
